<compile_context>
chip_gen: v7x
topology: tpu7x:2x2x1
jax: 0.10.0
libtpu: 0.0.40
codegen_flags: <defaults>
</compile_context>

<pallas_src>
import functools
import math

import jax
import jax.numpy as jnp
from jax import lax
from jax.experimental import pallas as pl
from jax.experimental.pallas import tpu as pltpu


# ------------------------------- utilities --------------------------------- #

def _pick_tile(n, cap, granule):
    """Largest tile <= cap that divides n (stepping by `granule`); n itself if n <= cap.

    Keeping tiles exact divisors avoids partial trailing blocks (no masking needed).
    """
    if n <= cap:
        return n
    t = (cap // granule) * granule
    while t >= granule:
        if n % t == 0:
            return t
        t -= granule
    # TODO(synk): no aligned divisor found -- fall back to the full (untiled) dim
    #             rather than emitting unmasked partial tiles.
    return n


@functools.lru_cache(maxsize=None)
def _vmem_limit_bytes():
    """~75% of physical VMEM (96 MiB on v5e/v6e, 48 MiB on v7x), capped at 100 MiB."""
    try:
        cap = int(pltpu.get_tpu_info().vmem_capacity_bytes)
    except Exception:          # conservative fallback (v7x physical size)
        cap = 64 * 1024 * 1024
    return min(cap * 3 // 4, 100 * 1024 * 1024)


# ----------------------------- Pallas kernels ------------------------------ #

def _qkv_head_proj_kernel(q_in, k_in, v_in, wq, wk, wv, bq, bk, bv,
                          q_out, k_out, v_out):
    # q_in: (1, tq, d_model) f32      k_in/v_in: (1, tkv, d_model) f32
    # w*:   (1, d_model, d_key) bf16  b*: (1, 1, d_key) f32
    # q_out: (1, 1, tq, d_key) bf16   k_out/v_out: (1, 1, tkv, d_key) bf16
    # The 1/sqrt(d_key) attention scale is folded into wq/bq by the wrapper.
    q_out[0, 0] = (jnp.dot(q_in[0].astype(jnp.bfloat16), wq[0],
                           preferred_element_type=jnp.float32)
                   + bq[0]).astype(q_out.dtype)
    k_out[0, 0] = (jnp.dot(k_in[0].astype(jnp.bfloat16), wk[0],
                           preferred_element_type=jnp.float32)
                   + bk[0]).astype(k_out.dtype)
    v_out[0, 0] = (jnp.dot(v_in[0].astype(jnp.bfloat16), wv[0],
                           preferred_element_type=jnp.float32)
                   + bv[0]).astype(v_out.dtype)


def pallas_qkv_head_projection(query, key, value,
                               wq_h, wk_h, wv_h, bq_h, bk_h, bv_h,
                               *, row_cap=256):
    """Fused Q/K/V projection emitting head-major tensors.

    query: (bs, nq, d_model), key/value: (bs, nk, d_model)
    w*_h:  (heads, d_model, d_key) bf16, b*_h: (heads, 1, d_key) f32
    returns q: (bs, heads, nq, d_key), k/v: (bs, heads, nk, d_key)  (bf16)
    """
    bs, nq, d_model = query.shape
    nk = key.shape[1]
    heads, _, d_key = wq_h.shape

    t_q = _pick_tile(nq, row_cap, 8)
    t_kv = _pick_tile(nk, row_cap, 8)
    q_tiles = pl.cdiv(nq, t_q)
    kv_tiles = pl.cdiv(nk, t_kv)
    n_tiles = max(q_tiles, kv_tiles)

    def _clamp(i, tiles):
        # Cross-attention (nq != nk): tensors with fewer row tiles than the grid just
        # recompute/rewrite their last block on the extra steps (idempotent).
        return i if tiles == n_tiles else jnp.minimum(i, tiles - 1)

    q_in_map = lambda h, b, i: (b, _clamp(i, q_tiles), 0)
    kv_in_map = lambda h, b, i: (b, _clamp(i, kv_tiles), 0)
    w_map = lambda h, b, i: (h, 0, 0)
    q_out_map = lambda h, b, i: (b, h, _clamp(i, q_tiles), 0)
    kv_out_map = lambda h, b, i: (b, h, _clamp(i, kv_tiles), 0)

    flops = 2 * bs * (nq + 2 * nk) * d_model * heads * d_key
    bytes_accessed = (4 * heads * bs * (nq + 2 * nk) * d_model   # f32 activations
                      + 2 * 3 * heads * d_model * d_key          # bf16 weights
                      + 2 * bs * heads * (nq + 2 * nk) * d_key)  # bf16 outputs

    # Grid order: heads OUTERMOST so each head's three (d_model, d_key) weight slices
    # stay VMEM-resident across the whole (batch, row-tile) sweep.
    return pl.pallas_call(
        _qkv_head_proj_kernel,
        out_shape=(
            jax.ShapeDtypeStruct((bs, heads, nq, d_key), jnp.bfloat16),
            jax.ShapeDtypeStruct((bs, heads, nk, d_key), jnp.bfloat16),
            jax.ShapeDtypeStruct((bs, heads, nk, d_key), jnp.bfloat16),
        ),
        grid_spec=pltpu.PrefetchScalarGridSpec(
            num_scalar_prefetch=0,
            grid=(heads, bs, n_tiles),
            in_specs=[
                pl.BlockSpec((1, t_q, d_model), q_in_map),
                pl.BlockSpec((1, t_kv, d_model), kv_in_map),
                pl.BlockSpec((1, t_kv, d_model), kv_in_map),
                pl.BlockSpec((1, d_model, d_key), w_map),
                pl.BlockSpec((1, d_model, d_key), w_map),
                pl.BlockSpec((1, d_model, d_key), w_map),
                pl.BlockSpec((1, 1, d_key), w_map),
                pl.BlockSpec((1, 1, d_key), w_map),
                pl.BlockSpec((1, 1, d_key), w_map),
            ],
            out_specs=(
                pl.BlockSpec((1, 1, t_q, d_key), q_out_map),
                pl.BlockSpec((1, 1, t_kv, d_key), kv_out_map),
                pl.BlockSpec((1, 1, t_kv, d_key), kv_out_map),
            ),
        ),
        compiler_params=pltpu.CompilerParams(
            dimension_semantics=("parallel", "parallel", "arbitrary"),
            vmem_limit_bytes=_vmem_limit_bytes()),
        cost_estimate=pl.CostEstimate(flops=flops, transcendentals=0,
                                      bytes_accessed=bytes_accessed),
    )(query, key, value, wq_h, wk_h, wv_h, bq_h, bk_h, bv_h)


def _flash_attn_kernel(q_ref, k_ref, v_ref, o_ref, m_sc, l_sc, acc_sc):
    # q_ref: (1,1,tq,d_key) bf16   k_ref/v_ref: (1,1,tk,d_key) bf16
    # o_ref: (1,1,tq,d_key) bf16   scratch: m/l (tq,1) f32, acc (tq,d_key) f32
    # The 1/sqrt(d_key) scale is already folded into the Q projection.
    # TODO(synk): optional boolean `mask` (masked_fill_ with -1e9) is not wired in.
    ki = pl.program_id(3)

    @pl.when(ki == 0)
    def _():
        m_sc[...] = jnp.full_like(m_sc, -jnp.inf)
        l_sc[...] = jnp.zeros_like(l_sc)
        acc_sc[...] = jnp.zeros_like(acc_sc)

    q = q_ref[0, 0]
    k = k_ref[0, 0]
    # Q @ K^T: contract the last dims directly on the MXU, f32 accumulation.
    s = lax.dot_general(q, k, (((1,), (1,)), ((), ())),
                        preferred_element_type=jnp.float32)          # (tq, tk) f32

    m_prev = m_sc[...]
    m_new = jnp.maximum(m_prev, jnp.max(s, axis=-1, keepdims=True))
    alpha = jnp.exp(m_prev - m_new)
    p = jnp.exp(s - m_new)
    l_sc[...] = alpha * l_sc[...] + jnp.sum(p, axis=-1, keepdims=True)
    acc_sc[...] = alpha * acc_sc[...] + jnp.dot(
        p.astype(v_ref.dtype), v_ref[0, 0], preferred_element_type=jnp.float32)
    m_sc[...] = m_new

    @pl.when(ki == pl.num_programs(3) - 1)
    def _():
        o_ref[0, 0] = (acc_sc[...] *
                       pl.reciprocal(l_sc[...], approx=True)).astype(o_ref.dtype)


def pallas_flash_attention(q, k, v, *, q_cap=256, kv_cap=512):
    """q: (bs, heads, nq, d_key), k/v: (bs, heads, nk, d_key) -> (bs, heads, nq, d_key)."""
    bs, heads, nq, d_key = q.shape
    nk = k.shape[2]
    tq = _pick_tile(nq, q_cap, 8)
    tk = _pick_tile(nk, kv_cap, 8)
    grid = (bs, heads, pl.cdiv(nq, tq), pl.cdiv(nk, tk))

    flops = 4 * bs * heads * nq * nk * d_key          # QK^T + PV
    transcendentals = bs * heads * nq * nk            # exp
    bytes_accessed = 2 * (2 * bs * heads * nq * d_key
                          + 2 * bs * heads * (nq // tq) * nk * d_key)

    return pl.pallas_call(
        _flash_attn_kernel,
        out_shape=jax.ShapeDtypeStruct((bs, heads, nq, d_key), jnp.bfloat16),
        grid_spec=pltpu.PrefetchScalarGridSpec(
            num_scalar_prefetch=0,
            grid=grid,
            in_specs=[
                pl.BlockSpec((1, 1, tq, d_key), lambda b, h, qi, ki: (b, h, qi, 0)),
                pl.BlockSpec((1, 1, tk, d_key), lambda b, h, qi, ki: (b, h, ki, 0)),
                pl.BlockSpec((1, 1, tk, d_key), lambda b, h, qi, ki: (b, h, ki, 0)),
            ],
            out_specs=pl.BlockSpec((1, 1, tq, d_key),
                                   lambda b, h, qi, ki: (b, h, qi, 0)),
            scratch_shapes=[pltpu.VMEM((tq, 1), jnp.float32),
                            pltpu.VMEM((tq, 1), jnp.float32),
                            pltpu.VMEM((tq, d_key), jnp.float32)],
        ),
        compiler_params=pltpu.CompilerParams(
            dimension_semantics=("parallel", "parallel", "parallel", "arbitrary"),
            vmem_limit_bytes=_vmem_limit_bytes()),
        cost_estimate=pl.CostEstimate(flops=flops, transcendentals=transcendentals,
                                      bytes_accessed=bytes_accessed),
    )(q, k, v)


def _linear_kernel(x_ref, w_ref, b_ref, o_ref):
    # x: (tm, K) -> bf16   w: (K, tn) bf16   b: (1, tn) f32   o: (tm, tn)
    o_ref[...] = (jnp.dot(x_ref[...].astype(jnp.bfloat16), w_ref[...],
                          preferred_element_type=jnp.float32)
                  + b_ref[...]).astype(o_ref.dtype)


def pallas_linear(x2d, w_bf16, b, *, tm_cap=512, tn_cap=512, out_dtype=jnp.float32):
    """y = x2d @ w + b, row x column tiled (bf16 MXU operands, f32 accumulation)."""
    M, K = x2d.shape
    N = w_bf16.shape[1]
    tm = _pick_tile(M, tm_cap, 8)       # sublane dim
    tn = _pick_tile(N, tn_cap, 128)     # lane dim: keep output stores lane-dense
    grid = (pl.cdiv(M, tm), pl.cdiv(N, tn))

    flops = 2 * M * K * N
    bytes_accessed = 2 * M * K * grid[1] + 2 * K * N * grid[0] + 4 * (N + M * N)

    return pl.pallas_call(
        _linear_kernel,
        out_shape=jax.ShapeDtypeStruct((M, N), out_dtype),
        grid_spec=pltpu.PrefetchScalarGridSpec(
            num_scalar_prefetch=0,
            grid=grid,
            in_specs=[
                pl.BlockSpec((tm, K), lambda i, j: (i, 0)),
                pl.BlockSpec((K, tn), lambda i, j: (0, j)),
                pl.BlockSpec((1, tn), lambda i, j: (0, j)),
            ],
            out_specs=pl.BlockSpec((tm, tn), lambda i, j: (i, j)),
        ),
        compiler_params=pltpu.CompilerParams(
            dimension_semantics=("parallel", "parallel"),
            vmem_limit_bytes=_vmem_limit_bytes()),
        cost_estimate=pl.CostEstimate(flops=flops, transcendentals=0,
                                      bytes_accessed=bytes_accessed),
    )(x2d, w_bf16, b.reshape(1, N))


# ----------------------------- Module wrapper ------------------------------ #

class MultiHeadAttentionPallas:
    def __init__(self, heads, d_model, drop_rate, rng_key):
        if d_model is None:
            raise ValueError('model dimension should be specified')
        assert d_model % heads == 0
        self.heads = heads
        self.d_model = d_model
        self.d_key = d_model // heads
        self.all_heads_size = self.d_key * heads
        self.drop_rate = drop_rate   # TODO(synk): dropout is identity (eval mode).

        def init_linear(key_, fan_in, fan_out):
            # deterministic init mimicking nn.Linear's U(-1/sqrt(fan_in), 1/sqrt(fan_in))
            kw, kb = jax.random.split(key_)
            bound = 1.0 / math.sqrt(fan_in)
            w = jax.random.uniform(kw, (fan_in, fan_out), jnp.float32, -bound, bound)
            b = jax.random.uniform(kb, (fan_out,), jnp.float32, -bound, bound)
            return w, b

        kq, kk, kv, ko = jax.random.split(rng_key, 4)
        self.wq, self.bq = init_linear(kq, d_model, self.all_heads_size)
        self.wk, self.bk = init_linear(kk, d_model, self.all_heads_size)
        self.wv, self.bv = init_linear(kv, d_model, self.all_heads_size)
        self.wo, self.bo = init_linear(ko, self.all_heads_size, d_model)

        # Pre-split weights per head: (heads, d_model, d_key) in bf16 for the MXU fast
        # path; biases stay f32 (added after the f32 accumulation).  The 1/sqrt(d_key)
        # attention scale is folded into the Q projection (free at runtime).
        scale = 1.0 / math.sqrt(self.d_key)

        def split_w(w, s=1.0):
            w3 = (w * s).reshape(d_model, heads, self.d_key)
            return jnp.transpose(w3, (1, 0, 2)).astype(jnp.bfloat16)

        def split_b(b, s=1.0):
            return (b * s).reshape(heads, 1, self.d_key)

        self.wq_h, self.bq_h = split_w(self.wq, scale), split_b(self.bq, scale)
        self.wk_h, self.bk_h = split_w(self.wk), split_b(self.bk)
        self.wv_h, self.bv_h = split_w(self.wv), split_b(self.bv)
        self.wo_lp = self.wo.astype(jnp.bfloat16)
        # TODO(synk): on v7x the projection weights could be stored in fp8 for ~2x MXU
        #             throughput; kept bf16 here for cross-chip (v5e/v6e) parity.

    def __call__(self, query, key, value, mask=None):
        # TODO(synk): the optional boolean `mask` path (masked_fill_ with -1e9) is not
        #             implemented; only the mask=None reference path.
        bs, nq, _ = query.shape

        # 1) fused Q/K/V projection -> head-major bf16 tensors (scale folded into Q).
        q, k, v = pallas_qkv_head_projection(
            query, key, value,
            self.wq_h, self.wk_h, self.wv_h,
            self.bq_h, self.bk_h, self.bv_h)

        # 2) flash attention; output layout (bs, heads, nq, d_key).
        att = pallas_flash_attention(q, k, v)

        # 3) Reproduce the module's `att.view(bs, seq_len, -1)` (no head un-permute!):
        #    with the (bs, heads, nq, d_key) layout this is a free row-major reshape.
        att_flat = att.reshape(bs * nq, self.heads * self.d_key)

        out = pallas_linear(att_flat, self.wo_lp, self.bo)
        return out.reshape(bs, nq, self.d_model)


# Pure-JAX f32 reference mirroring the PyTorch forward (for a sanity check).
def reference_forward(mha, query, key, value):
    def lin(x, w, b):
        return x @ w + b
    bs, nq, _ = query.shape
    nk = key.shape[1]
    q = lin(query, mha.wq, mha.bq).reshape(bs, nq, mha.heads, mha.d_key).transpose(0, 2, 1, 3)
    k = lin(key, mha.wk, mha.bk).reshape(bs, nk, mha.heads, mha.d_key).transpose(0, 2, 1, 3)
    v = lin(value, mha.wv, mha.bv).reshape(bs, nk, mha.heads, mha.d_key).transpose(0, 2, 1, 3)
    s = jnp.einsum("bhqd,bhkd->bhqk", q, k) / math.sqrt(mha.d_key)
    p = jax.nn.softmax(s, axis=-1)
    att = jnp.einsum("bhqk,bhkd->bhqd", p, v)
    att_flat = att.reshape(bs, nq, -1)   # same head-mixing view as the module
    return lin(att_flat, mha.wo, mha.bo)


if __name__ == "__main__":
    heads, d_model, drop_rate = 4, 32, 0.1
    bs, seq = 2, 8

    root = jax.random.PRNGKey(0)
    k_params, k_q, k_k, k_v = jax.random.split(root, 4)

    mha = MultiHeadAttentionPallas(heads, d_model, drop_rate, k_params)

    query = jax.random.normal(k_q, (bs, seq, d_model), jnp.float32)
    key = jax.random.normal(k_k, (bs, seq, d_model), jnp.float32)
    value = jax.random.normal(k_v, (bs, seq, d_model), jnp.float32)

    out = mha(query, key, value)
    jax.block_until_ready(out)

    ref = reference_forward(mha, query, key, value)
    assert out.shape == (bs, seq, d_model)
    assert jnp.allclose(out, ref, atol=5e-2, rtol=5e-2), "mismatch vs f32 reference"

    print("KERNEL_OK")
</pallas_src>

<mosaic_0001>
module attributes {stable_mosaic.version = 11 : i64} {
  func.func @_qkv_head_proj_kernel(%arg0: i32, %arg1: i32, %arg2: i32, %arg3: memref<1x8x32xf32, #tpu.memory_space<vmem>>, %arg4: memref<1x8x32xf32, #tpu.memory_space<vmem>>, %arg5: memref<1x8x32xf32, #tpu.memory_space<vmem>>, %arg6: memref<1x32x8xbf16, #tpu.memory_space<vmem>>, %arg7: memref<1x32x8xbf16, #tpu.memory_space<vmem>>, %arg8: memref<1x32x8xbf16, #tpu.memory_space<vmem>>, %arg9: memref<1x1x8xf32, #tpu.memory_space<vmem>>, %arg10: memref<1x1x8xf32, #tpu.memory_space<vmem>>, %arg11: memref<1x1x8xf32, #tpu.memory_space<vmem>>, %arg12: memref<1x1x8x8xbf16, #tpu.memory_space<vmem>>, %arg13: memref<1x1x8x8xbf16, #tpu.memory_space<vmem>>, %arg14: memref<1x1x8x8xbf16, #tpu.memory_space<vmem>>) attributes {dimension_semantics = [#tpu.dimension_semantics<parallel>, #tpu.dimension_semantics<parallel>, #tpu.dimension_semantics<arbitrary>], iteration_bounds = array<i64: 4, 2, 1>, scalar_prefetch = 0 : i64, scratch_operands = 0 : i64, tpu.core_type = #tpu.core_type<tc>, window_params = [{transform_indices = @transform_0, window_bounds = array<i64: 1, 8, 32>}, {transform_indices = @transform_1, window_bounds = array<i64: 1, 8, 32>}, {transform_indices = @transform_2, window_bounds = array<i64: 1, 8, 32>}, {transform_indices = @transform_3, window_bounds = array<i64: 1, 32, 8>}, {transform_indices = @transform_4, window_bounds = array<i64: 1, 32, 8>}, {transform_indices = @transform_5, window_bounds = array<i64: 1, 32, 8>}, {transform_indices = @transform_6, window_bounds = array<i64: 1, 1, 8>}, {transform_indices = @transform_7, window_bounds = array<i64: 1, 1, 8>}, {transform_indices = @transform_8, window_bounds = array<i64: 1, 1, 8>}, {transform_indices = @transform_9, window_bounds = array<i64: 1, 1, 8, 8>}, {transform_indices = @transform_10, window_bounds = array<i64: 1, 1, 8, 8>}, {transform_indices = @transform_11, window_bounds = array<i64: 1, 1, 8, 8>}]} {
    %c0 = arith.constant 0 : index
    %c0_0 = arith.constant 0 : index
    %c0_1 = arith.constant 0 : index
    %0 = vector.load %arg3[%c0, %c0_0, %c0_1] : memref<1x8x32xf32, #tpu.memory_space<vmem>>, vector<1x8x32xf32>
    %1 = vector.shape_cast %0 : vector<1x8x32xf32> to vector<8x32xf32>
    %2 = arith.truncf %1 : vector<8x32xf32> to vector<8x32xbf16>
    %c0_2 = arith.constant 0 : index
    %c0_3 = arith.constant 0 : index
    %c0_4 = arith.constant 0 : index
    %3 = vector.load %arg6[%c0_2, %c0_3, %c0_4] : memref<1x32x8xbf16, #tpu.memory_space<vmem>>, vector<1x32x8xbf16>
    %4 = vector.shape_cast %3 : vector<1x32x8xbf16> to vector<32x8xbf16>
    %cst = arith.constant dense<0.000000e+00> : vector<8x8xf32>
    %5 = tpu.matmul %2, %4, %cst {dimension_numbers = #tpu.dot_dimension_numbers<[1], [0], [0], [1], [0, 0, 1, 1], [], []>} : vector<8x32xbf16>, vector<32x8xbf16>, vector<8x8xf32> -> vector<8x8xf32>
    %c0_5 = arith.constant 0 : index
    %c0_6 = arith.constant 0 : index
    %c0_7 = arith.constant 0 : index
    %6 = vector.load %arg9[%c0_5, %c0_6, %c0_7] : memref<1x1x8xf32, #tpu.memory_space<vmem>>, vector<1x1x8xf32>
    %7 = vector.shape_cast %6 : vector<1x1x8xf32> to vector<1x8xf32>
    %8 = vector.broadcast %7 : vector<1x8xf32> to vector<8x8xf32>
    %9 = arith.addf %5, %8 : vector<8x8xf32>
    %10 = arith.truncf %9 : vector<8x8xf32> to vector<8x8xbf16>
    %c0_8 = arith.constant 0 : index
    %c0_9 = arith.constant 0 : index
    %c0_10 = arith.constant 0 : index
    %c0_11 = arith.constant 0 : index
    %11 = vector.load %arg12[%c0_8, %c0_9, %c0_10, %c0_11] : memref<1x1x8x8xbf16, #tpu.memory_space<vmem>>, vector<1x1x8x8xbf16>
    %12 = vector.shape_cast %11 : vector<1x1x8x8xbf16> to vector<8x8xbf16>
    %13 = vector.shape_cast %10 : vector<8x8xbf16> to vector<1x1x8x8xbf16>
    tpu.vector_store %arg12[%c0_8, %c0_9, %c0_10, %c0_11], %13 {strides = array<i32>} : memref<1x1x8x8xbf16, #tpu.memory_space<vmem>>, vector<1x1x8x8xbf16>,
    %c0_12 = arith.constant 0 : index
    %c0_13 = arith.constant 0 : index
    %c0_14 = arith.constant 0 : index
    %14 = vector.load %arg4[%c0_12, %c0_13, %c0_14] : memref<1x8x32xf32, #tpu.memory_space<vmem>>, vector<1x8x32xf32>
    %15 = vector.shape_cast %14 : vector<1x8x32xf32> to vector<8x32xf32>
    %16 = arith.truncf %15 : vector<8x32xf32> to vector<8x32xbf16>
    %c0_15 = arith.constant 0 : index
    %c0_16 = arith.constant 0 : index
    %c0_17 = arith.constant 0 : index
    %17 = vector.load %arg7[%c0_15, %c0_16, %c0_17] : memref<1x32x8xbf16, #tpu.memory_space<vmem>>, vector<1x32x8xbf16>
    %18 = vector.shape_cast %17 : vector<1x32x8xbf16> to vector<32x8xbf16>
    %cst_18 = arith.constant dense<0.000000e+00> : vector<8x8xf32>
    %19 = tpu.matmul %16, %18, %cst_18 {dimension_numbers = #tpu.dot_dimension_numbers<[1], [0], [0], [1], [0, 0, 1, 1], [], []>} : vector<8x32xbf16>, vector<32x8xbf16>, vector<8x8xf32> -> vector<8x8xf32>
    %c0_19 = arith.constant 0 : index
    %c0_20 = arith.constant 0 : index
    %c0_21 = arith.constant 0 : index
    %20 = vector.load %arg10[%c0_19, %c0_20, %c0_21] : memref<1x1x8xf32, #tpu.memory_space<vmem>>, vector<1x1x8xf32>
    %21 = vector.shape_cast %20 : vector<1x1x8xf32> to vector<1x8xf32>
    %22 = vector.broadcast %21 : vector<1x8xf32> to vector<8x8xf32>
    %23 = arith.addf %19, %22 : vector<8x8xf32>
    %24 = arith.truncf %23 : vector<8x8xf32> to vector<8x8xbf16>
    %c0_22 = arith.constant 0 : index
    %c0_23 = arith.constant 0 : index
    %c0_24 = arith.constant 0 : index
    %c0_25 = arith.constant 0 : index
    %25 = vector.load %arg13[%c0_22, %c0_23, %c0_24, %c0_25] : memref<1x1x8x8xbf16, #tpu.memory_space<vmem>>, vector<1x1x8x8xbf16>
    %26 = vector.shape_cast %25 : vector<1x1x8x8xbf16> to vector<8x8xbf16>
    %27 = vector.shape_cast %24 : vector<8x8xbf16> to vector<1x1x8x8xbf16>
    tpu.vector_store %arg13[%c0_22, %c0_23, %c0_24, %c0_25], %27 {strides = array<i32>} : memref<1x1x8x8xbf16, #tpu.memory_space<vmem>>, vector<1x1x8x8xbf16>,
    %c0_26 = arith.constant 0 : index
    %c0_27 = arith.constant 0 : index
    %c0_28 = arith.constant 0 : index
    %28 = vector.load %arg5[%c0_26, %c0_27, %c0_28] : memref<1x8x32xf32, #tpu.memory_space<vmem>>, vector<1x8x32xf32>
    %29 = vector.shape_cast %28 : vector<1x8x32xf32> to vector<8x32xf32>
    %30 = arith.truncf %29 : vector<8x32xf32> to vector<8x32xbf16>
    %c0_29 = arith.constant 0 : index
    %c0_30 = arith.constant 0 : index
    %c0_31 = arith.constant 0 : index
    %31 = vector.load %arg8[%c0_29, %c0_30, %c0_31] : memref<1x32x8xbf16, #tpu.memory_space<vmem>>, vector<1x32x8xbf16>
    %32 = vector.shape_cast %31 : vector<1x32x8xbf16> to vector<32x8xbf16>
    %cst_32 = arith.constant dense<0.000000e+00> : vector<8x8xf32>
    %33 = tpu.matmul %30, %32, %cst_32 {dimension_numbers = #tpu.dot_dimension_numbers<[1], [0], [0], [1], [0, 0, 1, 1], [], []>} : vector<8x32xbf16>, vector<32x8xbf16>, vector<8x8xf32> -> vector<8x8xf32>
    %c0_33 = arith.constant 0 : index
    %c0_34 = arith.constant 0 : index
    %c0_35 = arith.constant 0 : index
    %34 = vector.load %arg11[%c0_33, %c0_34, %c0_35] : memref<1x1x8xf32, #tpu.memory_space<vmem>>, vector<1x1x8xf32>
    %35 = vector.shape_cast %34 : vector<1x1x8xf32> to vector<1x8xf32>
    %36 = vector.broadcast %35 : vector<1x8xf32> to vector<8x8xf32>
    %37 = arith.addf %33, %36 : vector<8x8xf32>
    %38 = arith.truncf %37 : vector<8x8xf32> to vector<8x8xbf16>
    %c0_36 = arith.constant 0 : index
    %c0_37 = arith.constant 0 : index
    %c0_38 = arith.constant 0 : index
    %c0_39 = arith.constant 0 : index
    %39 = vector.load %arg14[%c0_36, %c0_37, %c0_38, %c0_39] : memref<1x1x8x8xbf16, #tpu.memory_space<vmem>>, vector<1x1x8x8xbf16>
    %40 = vector.shape_cast %39 : vector<1x1x8x8xbf16> to vector<8x8xbf16>
    %41 = vector.shape_cast %38 : vector<8x8xbf16> to vector<1x1x8x8xbf16>
    tpu.vector_store %arg14[%c0_36, %c0_37, %c0_38, %c0_39], %41 {strides = array<i32>} : memref<1x1x8x8xbf16, #tpu.memory_space<vmem>>, vector<1x1x8x8xbf16>,
    return
  }
  func.func @transform_0(%arg0: i32, %arg1: i32, %arg2: i32) -> (i32, i32, i32) {
    %c0_i32 = arith.constant 0 : i32
    %c0_i32_0 = arith.constant 0 : i32
    return %arg1, %arg2, %c0_i32 : i32, i32, i32
  }
  func.func @transform_1(%arg0: i32, %arg1: i32, %arg2: i32) -> (i32, i32, i32) {
    %c0_i32 = arith.constant 0 : i32
    %c0_i32_0 = arith.constant 0 : i32
    return %arg1, %arg2, %c0_i32 : i32, i32, i32
  }
  func.func @transform_2(%arg0: i32, %arg1: i32, %arg2: i32) -> (i32, i32, i32) {
    %c0_i32 = arith.constant 0 : i32
    %c0_i32_0 = arith.constant 0 : i32
    return %arg1, %arg2, %c0_i32 : i32, i32, i32
  }
  func.func @transform_3(%arg0: i32, %arg1: i32, %arg2: i32) -> (i32, i32, i32) {
    %c0_i32 = arith.constant 0 : i32
    %c0_i32_0 = arith.constant 0 : i32
    %c0_i32_1 = arith.constant 0 : i32
    return %arg0, %c0_i32, %c0_i32_0 : i32, i32, i32
  }
  func.func @transform_4(%arg0: i32, %arg1: i32, %arg2: i32) -> (i32, i32, i32) {
    %c0_i32 = arith.constant 0 : i32
    %c0_i32_0 = arith.constant 0 : i32
    %c0_i32_1 = arith.constant 0 : i32
    return %arg0, %c0_i32, %c0_i32_0 : i32, i32, i32
  }
  func.func @transform_5(%arg0: i32, %arg1: i32, %arg2: i32) -> (i32, i32, i32) {
    %c0_i32 = arith.constant 0 : i32
    %c0_i32_0 = arith.constant 0 : i32
    %c0_i32_1 = arith.constant 0 : i32
    return %arg0, %c0_i32, %c0_i32_0 : i32, i32, i32
  }
  func.func @transform_6(%arg0: i32, %arg1: i32, %arg2: i32) -> (i32, i32, i32) {
    %c0_i32 = arith.constant 0 : i32
    %c0_i32_0 = arith.constant 0 : i32
    %c0_i32_1 = arith.constant 0 : i32
    return %arg0, %c0_i32, %c0_i32_0 : i32, i32, i32
  }
  func.func @transform_7(%arg0: i32, %arg1: i32, %arg2: i32) -> (i32, i32, i32) {
    %c0_i32 = arith.constant 0 : i32
    %c0_i32_0 = arith.constant 0 : i32
    %c0_i32_1 = arith.constant 0 : i32
    return %arg0, %c0_i32, %c0_i32_0 : i32, i32, i32
  }
  func.func @transform_8(%arg0: i32, %arg1: i32, %arg2: i32) -> (i32, i32, i32) {
    %c0_i32 = arith.constant 0 : i32
    %c0_i32_0 = arith.constant 0 : i32
    %c0_i32_1 = arith.constant 0 : i32
    return %arg0, %c0_i32, %c0_i32_0 : i32, i32, i32
  }
  func.func @transform_9(%arg0: i32, %arg1: i32, %arg2: i32) -> (i32, i32, i32, i32) {
    %c0_i32 = arith.constant 0 : i32
    %c0_i32_0 = arith.constant 0 : i32
    return %arg1, %arg0, %arg2, %c0_i32 : i32, i32, i32, i32
  }
  func.func @transform_10(%arg0: i32, %arg1: i32, %arg2: i32) -> (i32, i32, i32, i32) {
    %c0_i32 = arith.constant 0 : i32
    %c0_i32_0 = arith.constant 0 : i32
    return %arg1, %arg0, %arg2, %c0_i32 : i32, i32, i32, i32
  }
  func.func @transform_11(%arg0: i32, %arg1: i32, %arg2: i32) -> (i32, i32, i32, i32) {
    %c0_i32 = arith.constant 0 : i32
    %c0_i32_0 = arith.constant 0 : i32
    return %arg1, %arg0, %arg2, %c0_i32 : i32, i32, i32, i32
  }
}

</mosaic_0001>

<bundles_post_ra>
// kernel: tpu_custom_call.1
= control target key start
LH: loop header
LB: loop body
LE: loop exit
PB: predicated region body
PF: predicated region fallthrough
CT: control target
= control target key end

     0   :  { %s1760_s0 = inlined_call_operand.vmem [shape: f32[2,8,32], index: 0, kind: input, shape index: {}]   ;;  %s1761_s1 = inlined_call_operand.vmem [shape: f32[2,8,32], index: 1, kind: input, shape index: {}]   ;;  %s1762_s2 = inlined_call_operand.vmem [shape: f32[2,8,32], index: 2, kind: input, shape index: {}]   ;;  %s1763_s3 = inlined_call_operand.vmem [shape: bf16[4,32,8], index: 3, kind: input, shape index: {}]   ;;  %s1764_s4 = inlined_call_operand.vmem [shape: bf16[4,32,8], index: 4, kind: input, shape index: {}]   ;;  %s1765_s5 = inlined_call_operand.vmem [shape: bf16[4,32,8], index: 5, kind: input, shape index: {}]   ;;  %s1766_s6 = inlined_call_operand.vmem [shape: f32[4,1,8], index: 6, kind: input, shape index: {}]   ;;  %s1767_s7 = inlined_call_operand.vmem [shape: f32[4,1,8], index: 7, kind: input, shape index: {}]   ;;  %s1768_s8 = inlined_call_operand.vmem [shape: f32[4,1,8], index: 8, kind: input, shape index: {}]   ;;  %s1769_s9 = inlined_call_operand.hbm [shape: bf16[2,4,8,8], index: 9, kind: output, shape index: {0}]   ;;  %s1770_s10 = inlined_call_operand.hbm [shape: bf16[2,4,8,8], index: 10, kind: output, shape index: {1}]   ;;  %s1771_s11 = inlined_call_operand.hbm [shape: bf16[2,4,8,8], index: 11, kind: output, shape index: {2}]  }
   0x1   :  { %1785 = sst [smem:[#allocation17_spill]] %s1769_s9 }
   0x2   :  { %1786 = sst [smem:[#allocation18_spill]] %s1770_s10 }
   0x3   :  { %1787 = sst [smem:[#allocation19_spill]] %s1771_s11 }
   0x4   :  { %17 = vsyncpa [#allocation3], 0 }
   0x5   :  { %19 = vsyncpa [#allocation3 + $0x1], 0 }
   0x6   :  { %20 = vsyncpa [#allocation5], 0 }
   0x7   :  { %22 = vsyncpa [#allocation5 + $0x1], 0  ;;  %s1497_s17 = smov 0   ;;  %s1499_s18 = smov 0  }
   0x8   :  { %s1501_s19 = smov 0   ;;  %s1503_s20 = smov 0  }
   0x9   :  { %s1505_s21 = smov 0   ;;  %s1507_s22 = smov 0  }
   0xa   :  { %s1509_s23 = smov 0   ;;  %s1511_s24 = smov 0  }
   0xb LB: > { %1788 = sst [smem:[#allocation9_spill]] %s1402_s17  ;;  %s1773_s25 = sadd.s32 4294967295, %s1430_s24   ;;  %s1430_s24 = sphi %s1511_s24, %s28_s24   ;;  %s1426_s23 = sphi %s1509_s23, %s1811_s23   ;;  %s1422_s22 = sphi %s1507_s22, %s1810_s22   ;;  %s1418_s21 = sphi %s1505_s21, %s1809_s21   ;;  %s1414_s20 = sphi %s1503_s20, %s1808_s20   ;;  %s1410_s19 = sphi %s1501_s19, %s1807_s19   ;;  %s1406_s18 = sphi %s1499_s18, %s1813_s18   ;;  %s1402_s17 = sphi %s1497_s17, %s1812_s17  }
   0xc   : > { %1789 = sst [smem:[#allocation10_spill]] %s1410_s19  ;;  %s1772_s26 = sadd.s32 4294967294, %s1430_s24  }
   0xd   : > { %1790 = sst [smem:[#allocation11_spill]] %s1422_s22  ;;  %s43_s27 = sadd.s32 1, %s1422_s22 }
   0xe   : > { %1791 = sst [smem:[#allocation12_spill]] %s1426_s23  ;;  %p45_p0 = scmp.ge.s32.totalorder %s43_s27, 2 }
   0xf   : > { %s47_s28 = sadd.s32 1, %s1426_s23  ;;  %p308_p1 = scmp.ne.s32.totalorder %s1410_s19, %s1406_s18 }
  0x10   : > { %p309_p2 = scmp.eq.s32.totalorder %s1773_s25, 7  ;;  %s1815_s27 = smov (%p45_p0, %s43_s27), 0 }
  0x11   : > { %1792 = sst [smem:[#allocation13_spill]] %s1815_s27  ;;  %s1817_s28 = smov (!%p45_p0, %s47_s28), %s1426_s23 }
  0x12   : > { %s291_s29 = ssub.s32 %s1422_s22, %s1815_s27  ;;  %p1550_p3 = por %p309_p2, %p308_p1 }
  0x13   : > { %p49_p4 = scmp.ge.s32.totalorder %s1817_s28, 4  ;;  %p314_p5 = scmp.ne.s32.totalorder %s1406_s18, %s1402_s17 }
  0x14   : > { %p315_p6 = scmp.eq.s32.totalorder %s1772_s26, 7  ;;  %p1115_p7 = scmp.ge.s32.totalorder %s1430_s24, 1 }
  0x15   : > { %s1819_s28 = smov (%p49_p4, %s1817_s28), 0  ;;  %p465_p9 = scmp.lt.s32.totalorder %s1430_s24, 9 }
  0x16   : > { %1794 = sst [smem:[#allocation14_spill]] %s1819_s28  ;;  %p1561_p8 = por %p315_p6, %p314_p5 }
  0x17   : > { %s292_s13 = ssub.s32 %s1426_s23, %s1819_s28  ;;  %s298_s14 = sadd.s32 1, %s1410_s19 }
  0x18   : > { %s1795_s12 = scalar_select %p1561_p8, 1, 0 }
  0x19   : > { %s293_s15 = sor.u32 %s292_s13, %s291_s29  ;;  %p466_p10 = pnand %p1115_p7, %p465_p9 }
  0x1a   : > { %1796 = sst [smem:[#allocation15_spill]] %s1795_s12  ;;  %p296_p11 = scmp.eq.s32.totalorder %s293_s15, 0  ;;  %v1432_v0 = vmov (!%p466_p10), 0.0   ;;  %vm1433_vm0 = vmmov (!%p466_p10), 0   ;;  %vm626_vm1 = vcmask (!%p466_p10), 261120   ;;  %vm671_vm2 = vcmask (!%p466_p10), 60416  }
  0x1b   : > { %469 = sbr.rel (%p466_p10) target bundleno = 323 (0x143), region = 56  ;;  %p576_p12 = scmp.lt.s32.totalorder (!%p466_p10), %s1418_s21, 3  ;;  %1163 = vmatprep.subr.bf16.mxu0 (!%p466_p10), %v1432_v0  ;;  %1171 = vmatprep.subr.bf16.mxu1 (!%p466_p10), %v1432_v0 }
  0x1c   : > { %s1570_s16 = scalar_select %p296_p11, %s1410_s19, %s298_s14  }
  0x1d   : > { %p555_p13 = scmp.lt.s32.totalorder (!%p466_p10), %s1414_s20, 1  ;;  %1167 = vmatprep.mubr.msk.bf16.mxu0 (!%p466_p10), %vm1433_vm0, %v1432_v0  ;;  %1175 = vmatprep.mubr.msk.bf16.mxu1 (!%p466_p10), %vm1433_vm0, %v1432_v0  ;;  %s538_s19 = sand.u32 (!%p466_p10), 1, %s1406_s18  }
  0x1e   : > { %1797 = sst [smem:[#allocation16_spill]] %s1570_s16  ;;  %s1608_s28 = sshll.u32 (!%p466_p10), %s538_s19, 2 }
  0x1f   : > { %s814_s11 = scalar_lea.sflag (!%p466_p10), [#allocation3], %s538_s19 }
  0x22   : > { %s1575_s26 = scalar_select %p576_p12, %s1418_s21, 3 }
  0x23   : > { %s556_s29 = scalar_select %p555_p13, %s1414_s20, 1 }
  0x24   : > { %s1151_s13 = sshll.u32 %s1575_s26, 4  ;;  %s593_s27 = scalar_lea.vmem %s1766_s6, %s1575_s26 }
  0x25   : > { %s580_s25 = scalar_lea.vmem %s1763_s3, %s1151_s13  ;;  %s585_s23 = scalar_lea.vmem %s1764_s4, %s1151_s13  ;;  %v1128_v13 = vld [vmem:[%s593_s27] ss:$0 sm:$0xff] }
  0x26   : > { %v1270_v1 = vld [vmem:[%s580_s25] sm:$0xff]   ;;  %s1119_s22 = sshll.u32 %s556_s29, 3  ;;  %v1271_v2 = vld [vmem:[%s580_s25 + $0x8] sm:$0xff]   ;;  %s590_s10 = scalar_lea.vmem %s1765_s5, %s1151_s13 }
  0x27   : > { %s561_s12 = scalar_lea.vmem %s1760_s0, %s1119_s22  ;;  %1164 = vmatpush3.bf16.msra.mxu0 %v1270_v1  ;;  %v1272_v3 = vld [vmem:[%s585_s23] sm:$0xff]   ;;  %s568_s15 = scalar_lea.vmem %s1761_s1, %s1119_s22  ;;  %v1274_v6 = vld [vmem:[%s585_s23 + $0x8] sm:$0xff]  }
  0x28   : > { %1165 = vmatprep.subr.bf16.mxu0 %v1432_v0  ;;  %v601_v4 = vld [vmem:[%s561_s12] sm:$0xff]  ;;  %1172 = vmatpush3.bf16.msra.mxu1 %v1272_v3  ;;  %s575_s9 = scalar_lea.vmem %s1762_s2, %s1119_s22  ;;  %v1275_v10 = vld [vmem:[%s590_s10 + $0x8] sm:$0xff]   ;;  %s1143_s23 = sshll.u32 %s1414_s20, 2 }
  0x29   : > { %v602_v5 = vpack.c.bf16 %v601_v4, %v601_v4  ;;  %1173 = vmatprep.subr.bf16.mxu1 %v1432_v0  ;;  %v673_v7 = vld [vmem:[%s568_s15] sm:$0xff]  ;;  %s596_s16 = scalar_lea.vmem %s1767_s7, %s1575_s26  ;;  %s836_s29 = sadd.s32 %s1418_s21, %s1143_s23 }
  0x2a   : > { %v1273_v8 = vld [vmem:[%s590_s10] sm:$0xff]   ;;  %v674_v9 = vpack.c.bf16 %v673_v7, %v673_v7  ;;  %s1615_s13 = sshll.u32 %s836_s29, 6  ;;  %s540_s20 = scalar_lea.vmem [#allocation2], %s1608_s28 }
  0x2b   : > { %1166 = vmatpush3.bf16.msra.mxu0 %v1271_v2  ;;  %v743_v11 = vld [vmem:[%s575_s9] sm:$0xff]  ;;  %s840_s14 = sshll.u32 %s540_s20, 4  ;;  %s599_s17 = scalar_lea.vmem %s1768_s8, %s1575_s26  ;;  %s1635_s14 = int_to_ptr.vmem [resolvable:$true] %s840_s14 }
  0x2c   : > { %1179 = vmatprep.subr.bf16.mxu0 %v1432_v0  ;;  %1174 = vmatpush3.bf16.msra.mxu1 %v1274_v6  ;;  %v744_v12 = vpack.c.bf16 %v743_v11, %v743_v11  ;;  %v1132_v15 = vld [vmem:[%s596_s16] ss:$0 sm:$0xff]  ;;  %s1798_s9 = sadd.s32 4294967295, %s1430_s24   ;;  %s1784_s21 = scalar_lea.vmem [#allocation4], %s1608_s28 }
  0x2d   : > { %s1624_s25 = sand.u32 1, %s1798_s9   ;;  %s856_s23 = sshll.u32 %s1784_s21, 4  ;;  %v1136_v27 = vld [vmem:[%s599_s17] ss:$0 sm:$0xff]  ;;  %s1643_s23 = int_to_ptr.vmem [resolvable:$true] %s856_s23 }
  0x2e   : > { %1168 = vmatmul.mubr.msk.bf16.vlgmr.msra.gmra.mrb[0].mxu0 %vm626_vm1, %v602_v5  ;;  %s1799_s10 = sld [smem:[#allocation17_spill]]  ;;  %s1800_s29 = sld [smem:[#allocation18_spill]] }
  0x2f   : > { %1180 = vmatpush3.bf16.msra.mxu0 %v1273_v8  ;;  %1183 = vmatprep.mubr.msk.bf16.mxu0 %vm1433_vm0, %v1432_v0  ;;  %s1276_s9 = scalar_lea.vmem %s1635_s14, 64  ;;  %s1434_s22 = smov [#allocation2]  }
  0x30   : > { %1181 = vmatprep.subr.bf16.mxu0 %v1432_v0  ;;  %1176 = vmatmul.mubr.msk.bf16.vlgmr.msra.gmra.mrb[0].mxu1 %vm626_vm1, %v674_v9  ;;  %p1277_p0 = scmp.ne.s32.totalorder %s1635_s14, %s1276_s9  ;;  %s1280_s27 = sshll.u32 %s1434_s22, 4  ;;  %s1281_s27 = int_to_ptr.vmem [resolvable:$false] %s1280_s27 }
  0x31   : > { %s1282_s21 = scalar_lea.vmem %s1281_s27, 128  ;;  %p1283_p4 = scmp.lt.s32.totalorder %s1635_s14, %s1281_s27 }
  0x32   : > { %p1278_p1 = pnand %p1277_p0, %p1550_p3  ;;  %p1284_p5 = scmp.lt.s32.totalorder %s1282_s21, %s1276_s9 }
  0x33   : > { %1182 = vmatpush3.bf16.msra.mxu0 %v1275_v10 }
  0x34   : > { %s1633_s26 = scalar_lea.hbm %s1799_s10, %s1615_s13  ;;  %s1641_s15 = scalar_lea.hbm %s1800_s29, %s1615_s13 }
  0x35   : > { %p1279_p2 = pneg %p1278_p1  ;;  %p1285_p6 = por %p1284_p5, %p1283_p4 }
  0x36   : > { %1184 = vmatmul.mubr.msk.bf16.vlgmr.msra.gmra.mrb[4].mxu0 %vm626_vm1, %v744_v12 }
  0x37   : > { %p1286_p7 = pnand %p1285_p6, %p1279_p2 }
 0x101   : > { %v664_v14 = vpop.f32.mrb[0].mxu0 }
 0x102   : > { %v665_v16 = vadd.f32 %v1128_v13, %v664_v14  ;;  %v1169_v17 = vpop.f32.mrb[1].mxu0 }
 0x103   : > { %v667_v18 = vpop.f32.mrb[2].mxu0  ;;  %v735_v19 = vpop.f32.mrb[0].mxu1 }
 0x104   : > { %v670_v20 = vpack.c.bf16 %v665_v16, %v665_v16  ;;  %v1170_v21 = vpop.f32.mrb[3].mxu0  ;;  %v736_v22 = vadd.f32 %v1132_v15, %v735_v19  ;;  %v1177_v23 = vpop.f32.mrb[1].mxu1 }
 0x105   : > { %v738_v24 = vpop.f32.mrb[2].mxu1 }
 0x106   : > { %v741_v25 = vpack.c.bf16 %v736_v22, %v736_v22  ;;  %v1178_v26 = vpop.f32.mrb[3].mxu1  ;;  %672 = vst.msk [vmem:[%s540_s20] sm:$0xf] %vm671_vm2, %v670_v20 }
 0x107   : > { %1289 = shalt.err (!%p1286_p7)
}
 0x108   : > { %s1290_s19 = scalar_lea.hbm %s1633_s26, 64  ;;  %s1294_s12 = scalar_lea.hbm %s1799_s10, 512 }
 0x109   : > { %p1291_p9 = scmp.ne.s32.totalorder %s1633_s26, %s1290_s19  ;;  %p1295_p12 = scmp.lt.u32.totalorder %s1633_s26, %s1799_s10 }
 0x10a   : > { %p1296_p13 = scmp.lt.u32.totalorder %s1294_s12, %s1290_s19  ;;  %p1298_p1 = scmp.lt.u32.totalorder %s1290_s19, %s1633_s26 }
 0x10b   : > { %p1292_p10 = pnand %p1291_p9, %p1550_p3 }
 0x10c   : > { %p1297_p0 = por %p1296_p13, %p1295_p12 }
 0x10d   : > { %p1293_p11 = pneg %p1292_p10 }
 0x10e   : > { %p1299_p2 = por %p1298_p1, %p1297_p0 }
 0x110   : > { %p1300_p4 = pnand %p1299_p2, %p1293_p11 }
 0x112   : > { %1303 = shalt.err (!%p1300_p4)
}
 0x113   : > { %1187 = dma.vmem_to_hbm [thread:$0]  (%p1550_p3), %s1635_s14, 64, %s1633_s26, %s814_s11   ;;  %v805_v28 = vpop.f32.mrb[4].mxu0 }
 0x114   : > { %s1801_s21 = scalar_lea.vmem [#allocation4], %s1608_s28  ;;  %s554_s9 = scalar_lea.vmem [#allocation6], %s1608_s28 }
 0x115   : > { %742 = vst.msk [vmem:[%s1801_s21] sm:$0xf] %vm671_vm2, %v741_v25  ;;  %s1675_s27 = sshll.u32 %s554_s9, 4  ;;  %s819_s19 = scalar_lea.sflag [#allocation5], %s1624_s25  ;;  %s873_s27 = int_to_ptr.vmem [resolvable:$true] %s1675_s27 }
 0x116   : > { %s1304_s20 = scalar_lea.vmem %s1643_s23, 64  ;;  %s1435_s17 = smov [#allocation4]  }
 0x117   : > { %p1305_p5 = scmp.ne.s32.totalorder %s1643_s23, %s1304_s20  ;;  %s1308_s12 = sshll.u32 %s1435_s17, 4  ;;  %s1309_s12 = int_to_ptr.vmem [resolvable:$false] %s1308_s12 }
 0x118   : > { %s1310_s16 = scalar_lea.vmem %s1309_s12, 128  ;;  %p1311_p9 = scmp.lt.s32.totalorder %s1643_s23, %s1309_s12 }
 0x119   : > { %p1306_p6 = pnand %p1305_p5, %p1550_p3  ;;  %p1312_p10 = scmp.lt.s32.totalorder %s1310_s16, %s1304_s20 }
 0x11b   : > { %p1307_p7 = pneg %p1306_p6  ;;  %p1313_p11 = por %p1312_p10, %p1311_p9 }
 0x11d   : > { %p1314_p12 = pnand %p1313_p11, %p1307_p7 }
 0x11f   : > { %1317 = shalt.err (!%p1314_p12)
}
 0x120   : > { %s1318_s14 = scalar_lea.hbm %s1641_s15, 64  ;;  %s1322_s22 = scalar_lea.hbm %s1800_s29, 512 }
 0x121   : > { %p1319_p13 = scmp.ne.s32.totalorder %s1641_s15, %s1318_s14  ;;  %p1323_p2 = scmp.lt.u32.totalorder %s1641_s15, %s1800_s29 }
 0x122   : > { %p1324_p4 = scmp.lt.u32.totalorder %s1322_s22, %s1318_s14  ;;  %p1326_p6 = scmp.lt.u32.totalorder %s1318_s14, %s1641_s15 }
 0x123   : > { %p1320_p0 = pnand %p1319_p13, %p1550_p3 }
 0x124   : > { %p1325_p5 = por %p1324_p4, %p1323_p2 }
 0x125   : > { %p1321_p1 = pneg %p1320_p0 }
 0x126   : > { %p1327_p7 = por %p1326_p6, %p1325_p5 }
 0x128   : > { %p1328_p9 = pnand %p1327_p7, %p1321_p1 }
 0x12a   : > { %1331 = shalt.err (!%p1328_p9)
}
 0x12b   : > { %1188 = dma.vmem_to_hbm [thread:$0]  (%p1550_p3), %s1643_s23, 64, %s1641_s15, %s819_s19   ;;  %v806_v29 = vadd.f32 %v1136_v27, %v805_v28  ;;  %v1185_v30 = vpop.f32.mrb[5].mxu0 }
 0x12c   : > { %v808_v31 = vpop.f32.mrb[6].mxu0  ;;  %s1802_s16 = sld [smem:[#allocation19_spill]]  ;;  %s1332_s26 = scalar_lea.vmem %s873_s27, 64 }
 0x12d   : > { %v811_v32 = vpack.c.bf16 %v806_v29, %v806_v29  ;;  %v1186_v33 = vpop.f32.mrb[7].mxu0  ;;  %p1333_p10 = scmp.ne.s32.totalorder %s873_s27, %s1332_s26  ;;  %s1436_s23 = smov [#allocation6]  }
 0x12e   : > { %s1336_s15 = sshll.u32 %s1436_s23, 4  ;;  %s1337_s15 = int_to_ptr.vmem [resolvable:$false] %s1336_s15 }
 0x12f   : > { %812 = vst.msk [vmem:[%s554_s9] sm:$0xf] %vm671_vm2, %v811_v32  ;;  %p1334_p11 = pnand %p1333_p10, %p1550_p3  ;;  %s1338_s11 = scalar_lea.vmem %s1337_s15, 128 }
 0x130   : > { %p1339_p13 = scmp.lt.s32.totalorder %s873_s27, %s1337_s15  ;;  %p1340_p0 = scmp.lt.s32.totalorder %s1338_s11, %s1332_s26 }
 0x131   : > { %p1335_p12 = pneg %p1334_p11 }
 0x132   : > { %s1705_s14 = scalar_lea.hbm %s1802_s16, %s1615_s13  ;;  %p1341_p1 = por %p1340_p0, %p1339_p13 }
 0x134   : > { %p1342_p2 = pnand %p1341_p1, %p1335_p12 }
 0x136   : > { %1345 = shalt.err (!%p1342_p2)
}
 0x137   : > { %s1346_s28 = scalar_lea.hbm %s1705_s14, 64  ;;  %s1350_s22 = scalar_lea.hbm %s1802_s16, 512 }
 0x138   : > { %p1347_p4 = scmp.ne.s32.totalorder %s1705_s14, %s1346_s28  ;;  %p1351_p7 = scmp.lt.u32.totalorder %s1705_s14, %s1802_s16 }
 0x139   : > { %p1352_p9 = scmp.lt.u32.totalorder %s1350_s22, %s1346_s28  ;;  %p1354_p11 = scmp.lt.u32.totalorder %s1346_s28, %s1705_s14 }
 0x13a   : > { %p1348_p5 = pnand %p1347_p4, %p1550_p3 }
 0x13b   : > { %p1353_p10 = por %p1352_p9, %p1351_p7 }
 0x13c   : > { %p1349_p6 = pneg %p1348_p5 }
 0x13d   : > { %p1355_p12 = por %p1354_p11, %p1353_p10 }
 0x13f   : > { %p1356_p13 = pnand %p1355_p12, %p1349_p6 }
 0x141   : > { %1359 = shalt.err (!%p1356_p13)
}
 0x142   : > { %1189 = dma.vmem_to_hbm [thread:$0]  (%p1550_p3), %s873_s27, 64, %s1705_s14, %s819_s19  }
 0x143 PF: > { %s1803_s20 = sld [smem:[#allocation9_spill]]  ;;  %p1203_p0 = scmp.ge.s32.totalorder %s1430_s24, 2 }
 0x145   : > { %p1194_p1 = pnand %p1203_p0, %p1561_p8 }
 0x149   : > { %s884_s26 = sand.u32 1, %s1803_s20  }
 0x14a   : > { %s885_s23 = scalar_lea.sflag [#allocation3], %s884_s26 }
 0x14b   : > { %1393 = dma.done.wait (!%p1194_p1), %s885_s23, 64  }
 0x14c   : > { %1395 = vsyncadd (!%p1194_p1), %s885_s23, 4294967232  ;;  %s1805_s15 = sadd.s32 4294967294, %s1430_s24  }
 0x14d   : > { %s893_s11 = sand.u32 1, %s1805_s15  }
 0x14e   : > { %s894_s28 = scalar_lea.sflag [#allocation5], %s893_s11 }
 0x14f   : > { %1397 = dma.done.wait (!%p1194_p1), %s894_s28, 128  }
 0x150   : > { %1399 = vsyncadd (!%p1194_p1), %s894_s28, 4294967168  ;;  %s28_s24 = sadd.s32 1, %s1430_s24   ;;  %s1806_s30 = sld [smem:[#allocation10_spill]] }
 0x151   : > { %p25_p3 = scmp.ge.s32.totalorder %s28_s24, 10   ;;  %s1807_s19 = sld [smem:[#allocation16_spill]] }
 0x152   : > { %s1808_s20 = sld [smem:[#allocation11_spill]]  ;;  %s1809_s21 = sld [smem:[#allocation12_spill]] }
 0x153   : > { %s1810_s22 = sld [smem:[#allocation13_spill]]  ;;  %s1811_s23 = sld [smem:[#allocation14_spill]] }
 0x154   : > { %s1812_s17 = smov %s1406_s18  ;;  %27 = sbr.rel (!%p25_p3) target bundleno = 11 (0xb), region = 147 }
 0x156   : > { %s1813_s18 = smov %s1806_s30 }
 0x15b   :  { %908 = vsyncpa [#allocation3], 1 }
 0x15c   :  { %910 = vsyncpa [#allocation3 + $0x1], 1 }
 0x15d   :  { %911 = vsyncpa [#allocation5], 1 }
 0x15e   :  { %913 = vsyncpa [#allocation5 + $0x1], 1 }

</bundles_post_ra>
